<compile_context>
chip_gen: v7x
topology: tpu7x:2x2x1
jax: 0.10.0
libtpu: 0.0.40
codegen_flags: <defaults>
</compile_context>

<pallas_src>
import functools

import jax
import jax.numpy as jnp
from jax.experimental import pallas as pl
from jax.experimental.pallas import tpu as pltpu

NEG_SLOPE = 0.01  # F.leaky_relu default
SUB = 8           # f32 sublane tile


def _round_up(n, m=SUB):
    return ((n + m - 1) // m) * m


def _leaky(v):
    return jnp.where(v > 0, v, NEG_SLOPE * v)


# ----------------------------------------------------------------------------
# Fused Autoencoder kernel: Encoder MLP -> state -> Decoder MLP -> prediction
# ----------------------------------------------------------------------------
def _fused_ae_kernel(x0_ref, act_ref, w_ref, b_ref, pred_ref, state_ref, *,
                     enc_specs, dec_specs, state_dim):
    """Whole forward pass in one kernel.

    All weights live in ONE packed (rows, width) VMEM ref; every dense layer is
    a static row/col slice of that ref (free view).  Specs are Python tuples
    (row_off, rows, cols, bias_idx) — the layer loop unrolls at trace time.
    """
    biases = b_ref[...].astype(jnp.float32)            # (n_dense, width), 1 load

    def dense(x, spec):
        off, rows, cols, bi = spec                      # static ints
        w = w_ref[off:off + rows, 0:cols].astype(jnp.float32)
        return (jnp.dot(x, w, preferred_element_type=jnp.float32)
                + biases[bi:bi + 1, 0:cols])

    # ---- Encoder: x0 already holds cat(obs, prev_state, prev_action) ----
    x = x0_ref[...].astype(jnp.float32)
    for spec in enc_specs:
        x = _leaky(dense(x, spec))
    # x: (B, sa_pad); cols [0:state_dim] = state, remaining cols are exactly 0
    # (zero weight cols + zero bias -> leaky(0) = 0).
    state_ref[...] = x[:, :state_dim].astype(state_ref.dtype)

    # ---- Decoder: act_ref carries `action` at cols [state_dim : state_dim+A]
    #      and zeros elsewhere, so cat(state, action) is a single add; the
    #      decoder L0 weight block has zero rows beyond state_dim+A.        ----
    y = x + act_ref[...].astype(jnp.float32)
    for spec in dec_specs[:-1]:
        y = _leaky(dense(y, spec))
    pred_ref[...] = dense(y, dec_specs[-1]).astype(pred_ref.dtype)   # no act


# ----------------------------------------------------------------------------
# Parameter construction (PyTorch-Linear-style uniform init) + packing
# ----------------------------------------------------------------------------
def _init_linear(key, in_dim, out_dim):
    kw, kb = jax.random.split(key)
    bound = 1.0 / float(in_dim) ** 0.5
    # Stored transposed: (in, out) so the kernel does x @ W + b.
    w = jax.random.uniform(kw, (in_dim, out_dim), jnp.float32, -bound, bound)
    b = jax.random.uniform(kb, (1, out_dim), jnp.float32, -bound, bound)
    return w, b


def make_autoencoder_params(key, obs_dim, hidden_dim, state_dim, action_dim,
                            output_dim, num_layers, weight_dtype=jnp.float32):
    """Builds raw (reference) params and a single packed weight/bias buffer.

    weight_dtype=jnp.bfloat16 halves weight DMA bytes (good on v6e/v7x); the
    kernel upcasts to f32 before the MXU dot, accumulation stays f32.
    """
    input_dim = obs_dim + state_dim + action_dim
    in_pad = _round_up(input_dim)
    h_pad = _round_up(hidden_dim)
    sa_pad = _round_up(state_dim + action_dim)
    width = max(h_pad, sa_pad, output_dim)   # packed-buffer lane width (<=128)

    keys = jax.random.split(key, 2 * num_layers + 1)
    ki = iter(keys)

    # ----- raw params mirroring the PyTorch module structure -----
    enc_raw = []
    if num_layers > 1:
        enc_raw.append(_init_linear(next(ki), input_dim, hidden_dim))
        for _ in range(num_layers - 2):
            enc_raw.append(_init_linear(next(ki), hidden_dim, hidden_dim))
        enc_raw.append(_init_linear(next(ki), hidden_dim, state_dim))
    else:
        enc_raw.append(_init_linear(next(ki), input_dim, state_dim))

    dec_hidden_raw = [_init_linear(next(ki), state_dim + action_dim, hidden_dim)]
    for _ in range(num_layers - 1):
        dec_hidden_raw.append(_init_linear(next(ki), hidden_dim, hidden_dim))
    dec_out_raw = _init_linear(next(ki), hidden_dim, output_dim)

    # ----- pack everything into ONE weight buffer + ONE bias buffer -----
    blocks, bias_rows, specs = [], [], []
    row_off = 0

    def add_dense(wb, rows_pad, cols_pad):
        nonlocal row_off
        w, b = wb
        wp = jnp.zeros((rows_pad, width), weight_dtype)
        wp = wp.at[:w.shape[0], :w.shape[1]].set(w.astype(weight_dtype))
        bp = jnp.zeros((1, width), weight_dtype)
        bp = bp.at[:, :b.shape[1]].set(b.astype(weight_dtype))
        blocks.append(wp)
        specs.append((row_off, rows_pad, cols_pad, len(bias_rows)))
        bias_rows.append(bp)
        row_off += rows_pad

    # Encoder: last layer's output is column-padded to sa_pad so `state` sits
    # in cols [0:state_dim] and the action slot / padding stays exactly zero.
    if num_layers > 1:
        add_dense(enc_raw[0], in_pad, h_pad)
        for wb in enc_raw[1:-1]:
            add_dense(wb, h_pad, h_pad)
        add_dense(enc_raw[-1], h_pad, sa_pad)
    else:
        add_dense(enc_raw[0], in_pad, sa_pad)
    n_enc = len(specs)

    # Decoder: L0 rows padded to sa_pad (zero rows beyond state+action dims).
    add_dense(dec_hidden_raw[0], sa_pad, h_pad)
    for wb in dec_hidden_raw[1:]:
        add_dense(wb, h_pad, h_pad)
    add_dense(dec_out_raw, h_pad, output_dim)

    return {
        "w_packed": jnp.concatenate(blocks, axis=0),    # (total_rows, width)
        "b_packed": jnp.concatenate(bias_rows, axis=0),  # (n_dense, width)
        "enc_specs": tuple(specs[:n_enc]),
        "dec_specs": tuple(specs[n_enc:]),
        "dims": {"state_dim": state_dim, "action_dim": action_dim,
                 "output_dim": output_dim, "in_pad": in_pad, "sa_pad": sa_pad},
        "raw": {"encoder": enc_raw, "decoder_hidden": dec_hidden_raw,
                "decoder_out": dec_out_raw},
    }


# ----------------------------------------------------------------------------
# Autoencoder forward (single fused pallas_call)
# ----------------------------------------------------------------------------
def autoencoder_forward(params, observation, action, prev_state, prev_action):
    batch = observation.shape[0]
    d = params["dims"]
    b_pad = _round_up(batch)   # full sublane tiles; zero rows sliced off after

    # One-time tiny layout prep (single concat + pads on (B, <=32) data):
    x0 = jnp.concatenate([observation, prev_state, prev_action], axis=1)
    x0 = jnp.pad(x0, ((0, b_pad - batch), (0, d["in_pad"] - x0.shape[1])))
    act = jnp.pad(action, ((0, b_pad - batch),
                           (d["state_dim"],
                            d["sa_pad"] - d["state_dim"] - d["action_dim"])))

    kernel = functools.partial(
        _fused_ae_kernel,
        enc_specs=params["enc_specs"],
        dec_specs=params["dec_specs"],
        state_dim=d["state_dim"],
    )
    vmem = pl.BlockSpec(memory_space=pltpu.MemorySpace.VMEM)

    pred_pad, state_pad = pl.pallas_call(
        kernel,
        out_shape=(
            jax.ShapeDtypeStruct((b_pad, d["output_dim"]), jnp.float32),
            jax.ShapeDtypeStruct((b_pad, d["state_dim"]), jnp.float32),
        ),
        in_specs=[vmem, vmem, vmem, vmem],
        out_specs=(vmem, vmem),
    )(x0, act, params["w_packed"], params["b_packed"])

    return pred_pad[:batch], state_pad[:batch]


# Pure-JAX reference (mirrors the PyTorch module exactly) for a sanity check.
def _reference_forward(params, observation, action, prev_state, prev_action):
    raw = params["raw"]
    x = jnp.concatenate([observation, prev_state, prev_action], axis=1)
    for w, b in raw["encoder"]:
        x = _leaky(x @ w + b)
    state = x
    x = jnp.concatenate([state, action], axis=1)
    for w, b in raw["decoder_hidden"]:
        x = _leaky(x @ w + b)
    w, b = raw["decoder_out"]
    prediction = x @ w + b
    return prediction, state


if __name__ == "__main__":
    batch = 4
    obs_dim = 20
    state_dim = 8
    action_dim = 4
    hidden_dim = 32
    output_dim = 16
    num_layers = 3

    key = jax.random.PRNGKey(0)
    kp, ko, ka, kps, kpa = jax.random.split(key, 5)

    params = make_autoencoder_params(
        kp, obs_dim, hidden_dim, state_dim, action_dim, output_dim, num_layers
    )

    observation = jax.random.normal(ko, (batch, obs_dim), jnp.float32)
    action = jax.random.normal(ka, (batch, action_dim), jnp.float32)
    prev_state = jax.random.normal(kps, (batch, state_dim), jnp.float32)
    prev_action = jax.random.normal(kpa, (batch, action_dim), jnp.float32)

    prediction, state = autoencoder_forward(
        params, observation, action, prev_state, prev_action
    )
    jax.block_until_ready((prediction, state))

    ref_pred, ref_state = _reference_forward(
        params, observation, action, prev_state, prev_action
    )
    assert prediction.shape == (batch, output_dim)
    assert state.shape == (batch, state_dim)
    assert jnp.allclose(prediction, ref_pred, atol=1e-5, rtol=1e-5)
    assert jnp.allclose(state, ref_state, atol=1e-5, rtol=1e-5)

    print("KERNEL_OK")
</pallas_src>

<mosaic_0001>
module attributes {stable_mosaic.version = 11 : i64} {
  func.func @_fused_ae_kernel(%arg0: memref<8x32xf32, #tpu.memory_space<vmem>>, %arg1: memref<8x16xf32, #tpu.memory_space<vmem>>, %arg2: memref<208x32xf32, #tpu.memory_space<vmem>>, %arg3: memref<7x32xf32, #tpu.memory_space<vmem>>, %arg4: memref<8x16xf32, #tpu.memory_space<vmem>>, %arg5: memref<8x8xf32, #tpu.memory_space<vmem>>) attributes {dimension_semantics = [], scalar_prefetch = 0 : i64, scratch_operands = 0 : i64, tpu.core_type = #tpu.core_type<tc>} {
    %c0 = arith.constant 0 : index
    %c0_0 = arith.constant 0 : index
    %0 = vector.load %arg3[%c0, %c0_0] : memref<7x32xf32, #tpu.memory_space<vmem>>, vector<7x32xf32>
    %c0_1 = arith.constant 0 : index
    %c0_2 = arith.constant 0 : index
    %1 = vector.load %arg0[%c0_1, %c0_2] : memref<8x32xf32, #tpu.memory_space<vmem>>, vector<8x32xf32>
    %c0_3 = arith.constant 0 : index
    %c0_4 = arith.constant 0 : index
    %2 = vector.load %arg2[%c0_3, %c0_4] : memref<208x32xf32, #tpu.memory_space<vmem>>, vector<32x32xf32>
    %cst = arith.constant dense<0.000000e+00> : vector<8x32xf32>
    %3 = tpu.matmul %1, %2, %cst {dimension_numbers = #tpu.dot_dimension_numbers<[1], [0], [0], [1], [0, 0, 1, 1], [], []>} : vector<8x32xf32>, vector<32x32xf32>, vector<8x32xf32> -> vector<8x32xf32>
    %4 = vector.extract_strided_slice %0 {offsets = [0, 0], sizes = [1, 32], strides = [1, 1]} : vector<7x32xf32> to vector<1x32xf32>
    %5 = vector.broadcast %4 : vector<1x32xf32> to vector<8x32xf32>
    %6 = arith.addf %3, %5 : vector<8x32xf32>
    %cst_5 = arith.constant 0.000000e+00 : f32
    %7 = vector.broadcast %cst_5 : f32 to vector<8x32xf32>
    %8 = arith.cmpf ogt, %6, %7 : vector<8x32xf32>
    %cst_6 = arith.constant 0.00999999977 : f32
    %9 = vector.broadcast %cst_6 : f32 to vector<8x32xf32>
    %10 = arith.mulf %9, %6 : vector<8x32xf32>
    %11 = arith.select %8, %6, %10 : vector<8x32xi1>, vector<8x32xf32>
    %c32 = arith.constant 32 : index
    %c0_7 = arith.constant 0 : index
    %12 = vector.load %arg2[%c32, %c0_7] : memref<208x32xf32, #tpu.memory_space<vmem>>, vector<32x32xf32>
    %cst_8 = arith.constant dense<0.000000e+00> : vector<8x32xf32>
    %13 = tpu.matmul %11, %12, %cst_8 {dimension_numbers = #tpu.dot_dimension_numbers<[1], [0], [0], [1], [0, 0, 1, 1], [], []>} : vector<8x32xf32>, vector<32x32xf32>, vector<8x32xf32> -> vector<8x32xf32>
    %14 = vector.extract_strided_slice %0 {offsets = [1, 0], sizes = [1, 32], strides = [1, 1]} : vector<7x32xf32> to vector<1x32xf32>
    %15 = vector.broadcast %14 : vector<1x32xf32> to vector<8x32xf32>
    %16 = arith.addf %13, %15 : vector<8x32xf32>
    %cst_9 = arith.constant 0.000000e+00 : f32
    %17 = vector.broadcast %cst_9 : f32 to vector<8x32xf32>
    %18 = arith.cmpf ogt, %16, %17 : vector<8x32xf32>
    %cst_10 = arith.constant 0.00999999977 : f32
    %19 = vector.broadcast %cst_10 : f32 to vector<8x32xf32>
    %20 = arith.mulf %19, %16 : vector<8x32xf32>
    %21 = arith.select %18, %16, %20 : vector<8x32xi1>, vector<8x32xf32>
    %c64 = arith.constant 64 : index
    %c0_11 = arith.constant 0 : index
    %22 = vector.load %arg2[%c64, %c0_11] : memref<208x32xf32, #tpu.memory_space<vmem>>, vector<32x16xf32>
    %cst_12 = arith.constant dense<0.000000e+00> : vector<8x16xf32>
    %23 = tpu.matmul %21, %22, %cst_12 {dimension_numbers = #tpu.dot_dimension_numbers<[1], [0], [0], [1], [0, 0, 1, 1], [], []>} : vector<8x32xf32>, vector<32x16xf32>, vector<8x16xf32> -> vector<8x16xf32>
    %24 = vector.extract_strided_slice %0 {offsets = [2, 0], sizes = [1, 16], strides = [1, 1]} : vector<7x32xf32> to vector<1x16xf32>
    %25 = vector.broadcast %24 : vector<1x16xf32> to vector<8x16xf32>
    %26 = arith.addf %23, %25 : vector<8x16xf32>
    %cst_13 = arith.constant 0.000000e+00 : f32
    %27 = vector.broadcast %cst_13 : f32 to vector<8x16xf32>
    %28 = arith.cmpf ogt, %26, %27 : vector<8x16xf32>
    %cst_14 = arith.constant 0.00999999977 : f32
    %29 = vector.broadcast %cst_14 : f32 to vector<8x16xf32>
    %30 = arith.mulf %29, %26 : vector<8x16xf32>
    %31 = arith.select %28, %26, %30 : vector<8x16xi1>, vector<8x16xf32>
    %32 = vector.extract_strided_slice %31 {offsets = [0, 0], sizes = [8, 8], strides = [1, 1]} : vector<8x16xf32> to vector<8x8xf32>
    %c0_15 = arith.constant 0 : index
    %c0_16 = arith.constant 0 : index
    %33 = vector.load %arg5[%c0_15, %c0_16] : memref<8x8xf32, #tpu.memory_space<vmem>>, vector<8x8xf32>
    tpu.vector_store %arg5[%c0_15, %c0_16], %32 {strides = array<i32>} : memref<8x8xf32, #tpu.memory_space<vmem>>, vector<8x8xf32>,
    %c0_17 = arith.constant 0 : index
    %c0_18 = arith.constant 0 : index
    %34 = vector.load %arg1[%c0_17, %c0_18] : memref<8x16xf32, #tpu.memory_space<vmem>>, vector<8x16xf32>
    %35 = arith.addf %31, %34 : vector<8x16xf32>
    %c96 = arith.constant 96 : index
    %c0_19 = arith.constant 0 : index
    %36 = vector.load %arg2[%c96, %c0_19] : memref<208x32xf32, #tpu.memory_space<vmem>>, vector<16x32xf32>
    %cst_20 = arith.constant dense<0.000000e+00> : vector<8x32xf32>
    %37 = tpu.matmul %35, %36, %cst_20 {dimension_numbers = #tpu.dot_dimension_numbers<[1], [0], [0], [1], [0, 0, 1, 1], [], []>} : vector<8x16xf32>, vector<16x32xf32>, vector<8x32xf32> -> vector<8x32xf32>
    %38 = vector.extract_strided_slice %0 {offsets = [3, 0], sizes = [1, 32], strides = [1, 1]} : vector<7x32xf32> to vector<1x32xf32>
    %39 = vector.broadcast %38 : vector<1x32xf32> to vector<8x32xf32>
    %40 = arith.addf %37, %39 : vector<8x32xf32>
    %cst_21 = arith.constant 0.000000e+00 : f32
    %41 = vector.broadcast %cst_21 : f32 to vector<8x32xf32>
    %42 = arith.cmpf ogt, %40, %41 : vector<8x32xf32>
    %cst_22 = arith.constant 0.00999999977 : f32
    %43 = vector.broadcast %cst_22 : f32 to vector<8x32xf32>
    %44 = arith.mulf %43, %40 : vector<8x32xf32>
    %45 = arith.select %42, %40, %44 : vector<8x32xi1>, vector<8x32xf32>
    %c112 = arith.constant 112 : index
    %c0_23 = arith.constant 0 : index
    %46 = vector.load %arg2[%c112, %c0_23] : memref<208x32xf32, #tpu.memory_space<vmem>>, vector<32x32xf32>
    %cst_24 = arith.constant dense<0.000000e+00> : vector<8x32xf32>
    %47 = tpu.matmul %45, %46, %cst_24 {dimension_numbers = #tpu.dot_dimension_numbers<[1], [0], [0], [1], [0, 0, 1, 1], [], []>} : vector<8x32xf32>, vector<32x32xf32>, vector<8x32xf32> -> vector<8x32xf32>
    %48 = vector.extract_strided_slice %0 {offsets = [4, 0], sizes = [1, 32], strides = [1, 1]} : vector<7x32xf32> to vector<1x32xf32>
    %49 = vector.broadcast %48 : vector<1x32xf32> to vector<8x32xf32>
    %50 = arith.addf %47, %49 : vector<8x32xf32>
    %cst_25 = arith.constant 0.000000e+00 : f32
    %51 = vector.broadcast %cst_25 : f32 to vector<8x32xf32>
    %52 = arith.cmpf ogt, %50, %51 : vector<8x32xf32>
    %cst_26 = arith.constant 0.00999999977 : f32
    %53 = vector.broadcast %cst_26 : f32 to vector<8x32xf32>
    %54 = arith.mulf %53, %50 : vector<8x32xf32>
    %55 = arith.select %52, %50, %54 : vector<8x32xi1>, vector<8x32xf32>
    %c144 = arith.constant 144 : index
    %c0_27 = arith.constant 0 : index
    %56 = vector.load %arg2[%c144, %c0_27] : memref<208x32xf32, #tpu.memory_space<vmem>>, vector<32x32xf32>
    %cst_28 = arith.constant dense<0.000000e+00> : vector<8x32xf32>
    %57 = tpu.matmul %55, %56, %cst_28 {dimension_numbers = #tpu.dot_dimension_numbers<[1], [0], [0], [1], [0, 0, 1, 1], [], []>} : vector<8x32xf32>, vector<32x32xf32>, vector<8x32xf32> -> vector<8x32xf32>
    %58 = vector.extract_strided_slice %0 {offsets = [5, 0], sizes = [1, 32], strides = [1, 1]} : vector<7x32xf32> to vector<1x32xf32>
    %59 = vector.broadcast %58 : vector<1x32xf32> to vector<8x32xf32>
    %60 = arith.addf %57, %59 : vector<8x32xf32>
    %cst_29 = arith.constant 0.000000e+00 : f32
    %61 = vector.broadcast %cst_29 : f32 to vector<8x32xf32>
    %62 = arith.cmpf ogt, %60, %61 : vector<8x32xf32>
    %cst_30 = arith.constant 0.00999999977 : f32
    %63 = vector.broadcast %cst_30 : f32 to vector<8x32xf32>
    %64 = arith.mulf %63, %60 : vector<8x32xf32>
    %65 = arith.select %62, %60, %64 : vector<8x32xi1>, vector<8x32xf32>
    %c176 = arith.constant 176 : index
    %c0_31 = arith.constant 0 : index
    %66 = vector.load %arg2[%c176, %c0_31] : memref<208x32xf32, #tpu.memory_space<vmem>>, vector<32x16xf32>
    %cst_32 = arith.constant dense<0.000000e+00> : vector<8x16xf32>
    %67 = tpu.matmul %65, %66, %cst_32 {dimension_numbers = #tpu.dot_dimension_numbers<[1], [0], [0], [1], [0, 0, 1, 1], [], []>} : vector<8x32xf32>, vector<32x16xf32>, vector<8x16xf32> -> vector<8x16xf32>
    %68 = vector.extract_strided_slice %0 {offsets = [6, 0], sizes = [1, 16], strides = [1, 1]} : vector<7x32xf32> to vector<1x16xf32>
    %69 = vector.broadcast %68 : vector<1x16xf32> to vector<8x16xf32>
    %70 = arith.addf %67, %69 : vector<8x16xf32>
    %c0_33 = arith.constant 0 : index
    %c0_34 = arith.constant 0 : index
    %71 = vector.load %arg4[%c0_33, %c0_34] : memref<8x16xf32, #tpu.memory_space<vmem>>, vector<8x16xf32>
    tpu.vector_store %arg4[%c0_33, %c0_34], %70 {strides = array<i32>} : memref<8x16xf32, #tpu.memory_space<vmem>>, vector<8x16xf32>,
    return
  }
}

</mosaic_0001>

<bundles_post_ra>
// kernel: tpu_custom_call.1
= control target key start
LH: loop header
LB: loop body
LE: loop exit
PB: predicated region body
PF: predicated region fallthrough
CT: control target
= control target key end

     0   :  { %11 = vsyncpa [#allocation3], 0  ;;  %v846_v3 = vmov 0.0|0.0   ;;  %vm847_vm0 = vmmov 0   ;;  %v848_v6 = vmov 0.0   ;;  %s1045_s0 = inlined_call_operand.vmem [shape: f32[8,32], index: 0, kind: input, shape index: {}]   ;;  %s1046_s1 = inlined_call_operand.vmem [shape: f32[8,16], index: 1, kind: input, shape index: {}]   ;;  %s1047_s2 = inlined_call_operand.vmem [shape: f32[208,32], index: 2, kind: input, shape index: {}]   ;;  %s1048_s3 = inlined_call_operand.vmem [shape: f32[7,32], index: 3, kind: input, shape index: {}]   ;;  %s1049_s4 = inlined_call_operand.hbm [shape: f32[8,16], index: 4, kind: output, shape index: {0}]   ;;  %s1050_s5 = inlined_call_operand.hbm [shape: f32[8,8], index: 5, kind: output, shape index: {1}]  }
   0x1   :  { %v23_v0 = vld [vmem:[%s1047_s2] sm:$0xff]  ;;  %v24_v1 = vld [vmem:[%s1047_s2 + $0x8] sm:$0xff]  ;;  %v25_v2 = vld [vmem:[%s1047_s2 + $0x10] sm:$0xff]  ;;  %754 = vmatprep.subr.bf16.mxu0 %v846_v3  ;;  %689 = vmatprep.mubr.msk.f32.mxu0 %vm847_vm0, %v848_v6 }
   0x2   :  { %v755_v4 = vpack.c.bf16 %v24_v1, %v23_v0  ;;  %v26_v5 = vld [vmem:[%s1047_s2 + $0x18] sm:$0xff]  ;;  %v108_v7 = vld [vmem:[%s1047_s2 + $0x20] sm:$0xff]  ;;  %760 = vmatprep.subr.bf16.mxu1 %v846_v3  ;;  %v109_v8 = vld [vmem:[%s1047_s2 + $0x28] sm:$0xff]  ;;  %700 = vmatprep.mubr.msk.f32.mxu1 %vm847_vm0, %v848_v6 }
   0x3   :  { %12 = vsyncpa [#allocation5], 0  ;;  %v758_v9 = vpack.c.bf16 %v26_v5, %v25_v2  ;;  %v761_v10 = vpack.c.bf16 %v109_v8, %v108_v7  ;;  %v22_v11 = vld [vmem:[%s1045_s0] sm:$0xff]  ;;  %vm31_vm1 = vcmask 261120   ;;  %v110_v12 = vld [vmem:[%s1047_s2 + $0x30] sm:$0xff]  ;;  %v27_v18 = vlaneseq  ;;  %s849_s21 = smov [#allocation4]  }
   0x4   :  { %756 = vmatpush3.bf16.msra.mxu0 %v755_v4  ;;  %v111_v13 = vld [vmem:[%s1047_s2 + $0x38] sm:$0xff]  ;;  %v192_v15 = vld [vmem:[%s1047_s2 + $0x40] sm:$0xff]  ;;  %v193_v16 = vld [vmem:[%s1047_s2 + $0x48] sm:$0xff]  ;;  %vm276_vm5 = vcmask 64512   ;;  %vm286_vm6 = vcmask 130048   ;;  %s629_s22 = sshll.u32 %s849_s21, 4  ;;  %s630_s22 = int_to_ptr.vmem [resolvable:$true] %s629_s22 }
   0x5   :  { %757 = vmatprep.subr.bf16.mxu0 %v846_v3  ;;  %762 = vmatpush3.bf16.msra.mxu1 %v761_v10  ;;  %v764_v14 = vpack.c.bf16 %v111_v13, %v110_v12  ;;  %v767_v17 = vpack.c.bf16 %v193_v16, %v192_v15  ;;  %v928_v19 = vshrl.u32 %v27_v18, 7  ;;  %v934_v21 = vld [vmem:[%s1048_s3] sm:$0x7f]  ;;  %v194_v28 = vld [vmem:[%s1047_s2 + $0x50] sm:$0xff]  ;;  %v195_v29 = vld [vmem:[%s1047_s2 + $0x58] sm:$0xff]  ;;  %s798_s23 = scalar_lea.vmem %s630_s22, 128  ;;  %p803_p1 = scmp.lt.s32.totalorder %s630_s22, %s630_s22 }
   0x6   :  { %763 = vmatprep.subr.bf16.mxu1 %v846_v3  ;;  %v770_v30 = vpack.c.bf16 %v195_v29, %v194_v28  ;;  %v280_v38 = vld [vmem:[%s1047_s2 + $0x60] sm:$0xff]  ;;  %v281_v39 = vld [vmem:[%s1047_s2 + $0x68] sm:$0xff]  ;;  %v363_v46 = vld [vmem:[%s1047_s2 + $0x70] sm:$0xff]  ;;  %p799_p0 = scmp.ne.s32.totalorder %s630_s22, %s798_s23  ;;  %p804_p2 = scmp.lt.s32.totalorder %s798_s23, %s798_s23 }
   0x7   :  { %v29_v20 = vsub.s32 0, %v928_v19  ;;  %v114_v31 = vsub.s32 1, %v928_v19  ;;  %v773_v40 = vpack.c.bf16 %v281_v39, %v280_v38  ;;  %v198_v41 = vsub.s32 2, %v928_v19  ;;  %v364_v47 = vld [vmem:[%s1047_s2 + $0x78] sm:$0xff]  ;;  %v278_v49 = vld [vmem:[%s1046_s1] sm:$0xff]  ;;  %v366_v54 = vld [vmem:[%s1047_s2 + $0x88] sm:$0xff] }
   0x8   :  { %759 = vmatpush3.bf16.msra.mxu0 %v758_v9  ;;  %v776_v51 = vpack.c.bf16 %v364_v47, %v363_v46  ;;  %v365_v53 = vld [vmem:[%s1047_s2 + $0x80] sm:$0xff]  ;;  %v447_v56 = vld [vmem:[%s1047_s2 + $0x90] sm:$0xff]  ;;  %v448_v57 = vld [vmem:[%s1047_s2 + $0x98] sm:$0xff]  ;;  %v284_v59 = vsub.s32 3, %v928_v19  ;;  %v453_v18 = vsub.s32 5, %v928_v19  ;;  %p805_p3 = por %p804_p2, %p803_p1 }
   0x9   :  { %766 = vmatprep.subr.bf16.mxu0 %v846_v3  ;;  %765 = vmatpush3.bf16.msra.mxu1 %v764_v14  ;;  %v30_v22 = vrot.slane %v934_v21, %v29_v20  ;;  %v115_v32 = vrot.slane %v934_v21, %v114_v31  ;;  %v199_v42 = vrot.slane %v934_v21, %v198_v41  ;;  %v449_v2 = vld [vmem:[%s1047_s2 + $0xa0] sm:$0xff]  ;;  %v450_v4 = vld [vmem:[%s1047_s2 + $0xa8] sm:$0xff]  ;;  %v531_v7 = vld [vmem:[%s1047_s2 + $0xb0] sm:$0xff] }
   0xa   :  { %772 = vmatprep.subr.bf16.mxu1 %v846_v3  ;;  %v779_v55 = vpack.c.bf16 %v366_v54, %v365_v53  ;;  %v782_v58 = vpack.c.bf16 %v448_v57, %v447_v56  ;;  %v285_v60 = vrot.slane %v934_v21, %v284_v59  ;;  %v785_v5 = vpack.c.bf16 %v450_v4, %v449_v2  ;;  %v532_v8 = vld [vmem:[%s1047_s2 + $0xb8] sm:$0xff]  ;;  %v533_v16 = vld [vmem:[%s1047_s2 + $0xc0] sm:$0xff]  ;;  %p806_p4 = pnand %p805_p3, %p799_p0 }
   0xb   :  { %690 = vmatmul.mubr.msk.f32.vlgmr.msra.gmra.mrb[0].mxu0 %vm31_vm1, %v22_v11  ;;  %v788_v9 = vpack.c.bf16 %v532_v8, %v531_v7  ;;  %v454_v20 = vrot.slane %v934_v21, %v453_v18 }
   0xc   :  { %711 = vmatprep.mubr.msk.f32.mxu0 %vm847_vm0, %v848_v6  ;;  %768 = vmatpush3.bf16.msra.mxu0 %v767_v17 }
   0xd   :  { %769 = vmatprep.subr.bf16.mxu0 %v846_v3 }
  0x10   :  { %771 = vmatpush3.bf16.msra.mxu0 %v770_v30 }
  0x11   :  { %781 = vmatprep.subr.bf16.mxu0 %v846_v3 }
  0xde   :  { %v101_v23 = vpop.f32.mrb[0].mxu0 }
  0xdf   :  { %v102_v24 = vadd.f32 %v101_v23, %v30_v22  ;;  %v691_v25 = vpop.f32.mrb[1].mxu0 }
  0xe1   :  { %vm105_vm2 = vcmp.gt.f32.partialorder %v102_v24, 0.0  ;;  %v106_v26 = vmul.f32 0.01, %v102_v24 }
  0xe3   :  { %v107_v27 = vsel %vm105_vm2, %v102_v24, %v106_v26 }
  0xe4   :  { %701 = vmatmul.mubr.msk.f32.vlgmr.msra.gmra.mrb[0].mxu1 %vm31_vm1, %v107_v27 }
  0xe5   :  { %718 = vmatprep.mubr.msk.f32.mxu1 %vm847_vm0, %v848_v6  ;;  %774 = vmatpush3.bf16.msra.mxu1 %v773_v40 }
  0xe6   :  { %775 = vmatprep.subr.bf16.mxu1 %v846_v3 }
 0x1b7   :  { %v185_v33 = vpop.f32.mrb[0].mxu1 }
 0x1b8   :  { %v186_v34 = vadd.f32 %v185_v33, %v115_v32  ;;  %v702_v35 = vpop.f32.mrb[1].mxu1 }
 0x1ba   :  { %vm189_vm3 = vcmp.gt.f32.partialorder %v186_v34, 0.0  ;;  %v190_v36 = vmul.f32 0.01, %v186_v34 }
 0x1bc   :  { %v191_v37 = vsel %vm189_vm3, %v186_v34, %v190_v36 }
 0x1bd   :  { %712 = vmatmul.mubr.msk.f32.vlgmr.msra.gmra.mrb[2].mxu0 %vm31_vm1, %v191_v37 }
 0x1be   :  { %740 = vmatprep.mubr.msk.f32.mxu0 %vm847_vm0, %v848_v6  ;;  %783 = vmatpush3.bf16.msra.mxu0 %v782_v58 }
 0x1bf   :  { %784 = vmatprep.subr.bf16.mxu0 %v846_v3 }
 0x1c2   :  { %786 = vmatpush3.bf16.msra.mxu0 %v785_v5 }
 0x290   :  { %v269_v43 = vpop.f32.mrb[2].mxu0 }
 0x291   :  { %v270_v44 = vadd.f32 %v269_v43, %v199_v42  ;;  %v713_v45 = vpop.f32.mrb[3].mxu0 }
 0x293   :  { %vm273_vm4 = vcmp.gt.f32.partialorder %v270_v44, 0.0  ;;  %v274_v48 = vmul.f32 0.01, %v270_v44 }
 0x295   :  { %v275_v50 = vsel %vm273_vm4, %v270_v44, %v274_v48 }
 0x296   :  { %v279_v52 = vadd.f32 %v278_v49, %v275_v50  ;;  %277 = vst.msk [vmem:[#allocation4] sm:$0xff] %vm276_vm5, %v275_v50 }
 0x298   :  { %719 = vmatmul.mubr.msk.f32.vlgmr.msra.gmra.mrb[2].mxu1 %vm286_vm6, %v279_v52 }
 0x299   :  { %777 = vmatpush3.bf16.msra.mxu1 %v776_v51  ;;  %729 = vmatprep.mubr.msk.f32.mxu1 %vm847_vm0, %v848_v6 }
 0x29a   :  { %778 = vmatprep.subr.bf16.mxu1 %v846_v3 }
 0x29d   :  { %780 = vmatpush3.bf16.msra.mxu1 %v779_v55 }
 0x29e   :  { %787 = vmatprep.subr.bf16.mxu1 %v846_v3 }
 0x36b   :  { %v356_v61 = vpop.f32.mrb[2].mxu1 }
 0x36c   :  { %v357_v62 = vadd.f32 %v356_v61, %v285_v60  ;;  %v720_v63 = vpop.f32.mrb[3].mxu1 }
 0x36e   :  { %vm360_vm7 = vcmp.gt.f32.partialorder %v357_v62, 0.0  ;;  %v361_v0 = vmul.f32 0.01, %v357_v62 }
 0x370   :  { %v362_v1 = vsel %vm360_vm7, %v357_v62, %v361_v0 }
 0x371   :  { %730 = vmatmul.mubr.msk.f32.vlgmr.msra.gmra.mrb[4].mxu1 %vm31_vm1, %v362_v1 }
 0x372   :  { %751 = vmatprep.mubr.msk.f32.mxu1 %vm847_vm0, %v848_v6  ;;  %789 = vmatpush3.bf16.msra.mxu1 %v788_v9  ;;  %v369_v6 = vsub.s32 4, %v928_v19 }
 0x373   :  { %790 = vmatprep.subr.bf16.mxu1 %v846_v3  ;;  %v534_v3 = vld [vmem:[%s1047_s2 + $0xc8] sm:$0xff] }
 0x374   :  { %v370_v10 = vrot.slane %v934_v21, %v369_v6  ;;  %v791_v17 = vpack.c.bf16 %v534_v3, %v533_v16 }
 0x376   :  { %792 = vmatpush3.bf16.msra.mxu1 %v791_v17 }
 0x444   :  { %v440_v11 = vpop.f32.mrb[4].mxu1 }
 0x445   :  { %v441_v12 = vadd.f32 %v440_v11, %v370_v10  ;;  %v731_v13 = vpop.f32.mrb[5].mxu1 }
 0x447   :  { %vm444_vm8 = vcmp.gt.f32.partialorder %v441_v12, 0.0  ;;  %v445_v14 = vmul.f32 0.01, %v441_v12 }
 0x449   :  { %v446_v15 = vsel %vm444_vm8, %v441_v12, %v445_v14 }
 0x44a   :  { %741 = vmatmul.mubr.msk.f32.vlgmr.msra.gmra.mrb[4].mxu0 %vm31_vm1, %v446_v15 }
 0x51d   :  { %v524_v22 = vpop.f32.mrb[4].mxu0 }
 0x51e   :  { %v525_v23 = vadd.f32 %v524_v22, %v454_v20  ;;  %v742_v24 = vpop.f32.mrb[5].mxu0 }
 0x520   :  { %vm528_vm9 = vcmp.gt.f32.partialorder %v525_v23, 0.0  ;;  %v529_v25 = vmul.f32 0.01, %v525_v23 }
 0x522   :  { %v530_v26 = vsel %vm528_vm9, %v525_v23, %v529_v25 }
 0x523   :  { %752 = vmatmul.mubr.msk.f32.vlgmr.msra.gmra.mrb[6].mxu1 %vm31_vm1, %v530_v26 }
 0x524   :  { %809 = shalt.err (!%p806_p4)
}
 0x525   :  { %s810_s25 = scalar_lea.hbm %s1050_s5, 128 }
 0x526   :  { %p811_p5 = scmp.ne.s32.totalorder %s1050_s5, %s810_s25  ;;  %p814_p6 = scmp.lt.u32.totalorder %s810_s25, %s1050_s5 }
 0x528   :  { %p816_p7 = pnand %p814_p6, %p811_p5 }
 0x52a   :  { %819 = shalt.err (!%p816_p7)
}
 0x52b   :  { %632 = dma.vmem_to_hbm [thread:$0]  %s630_s22, 128, %s1050_s5, [#allocation5]   ;;  %v537_v27 = vsub.s32 6, %v928_v19 }
 0x52c   :  { %s850_s1 = smov [#allocation2]  }
 0x52d   :  { %v538_v28 = vrot.slane %v934_v21, %v537_v27  ;;  %s619_s7 = sshll.u32 %s850_s1, 4  ;;  %s620_s7 = int_to_ptr.vmem [resolvable:$true] %s619_s7 }
 0x52e   :  { %s820_s8 = scalar_lea.vmem %s620_s7, 128  ;;  %p825_p9 = scmp.lt.s32.totalorder %s620_s7, %s620_s7 }
 0x52f   :  { %p821_p8 = scmp.ne.s32.totalorder %s620_s7, %s820_s8  ;;  %p826_p10 = scmp.lt.s32.totalorder %s820_s8, %s820_s8 }
 0x531   :  { %p827_p11 = por %p826_p10, %p825_p9 }
 0x533   :  { %p828_p12 = pnand %p827_p11, %p821_p8 }
 0x5f6   :  { %v608_v29 = vpop.f32.mrb[6].mxu1 }
 0x5f7   :  { %v609_v30 = vadd.f32 %v608_v29, %v538_v28  ;;  %v753_v31 = vpop.f32.mrb[7].mxu1 }
 0x5f9   :  { %612 = vst.msk [vmem:[#allocation2] sm:$0xff] %vm286_vm6, %v609_v30 }
 0x5fa   :  { %831 = shalt.err (!%p828_p12)
}
 0x5fb   :  { %s832_s10 = scalar_lea.hbm %s1049_s4, 128 }
 0x5fc   :  { %p833_p13 = scmp.ne.s32.totalorder %s1049_s4, %s832_s10  ;;  %p836_p0 = scmp.lt.u32.totalorder %s832_s10, %s1049_s4 }
 0x5fe   :  { %p838_p1 = pnand %p836_p0, %p833_p13 }
 0x600   :  { %841 = shalt.err (!%p838_p1)
}
 0x601   :  { %622 = dma.vmem_to_hbm [thread:$0]  %s620_s7, 128, %s1049_s4, [#allocation3]  }
 0x602   :  { %842 = dma.done.wait [#allocation3], 128  }
 0x603   :  { %843 = vsyncadd [#allocation3], 4294967168 }
 0x604   :  { %844 = dma.done.wait [#allocation5], 128  }
 0x605   :  { %845 = vsyncadd [#allocation5], 4294967168 }
 0x606   :  { %639 = vsyncpa [#allocation3], 1 }
 0x607   :  { %640 = vsyncpa [#allocation5], 1 }

</bundles_post_ra>
